<compile_context>
chip_gen: v7x
topology: tpu7x:2x2x1
jax: 0.10.0
libtpu: 0.0.40
codegen_flags: <defaults>
</compile_context>

<pallas_src>
import functools

import jax
import jax.numpy as jnp
from jax import lax
from jax.experimental import pallas as pl
from jax.experimental.pallas import tpu as pltpu


_TAPS = tuple((dy, dx) for dy in range(3) for dx in range(3))


# ---------------------------------------------------------------------------
# Kernels
# ---------------------------------------------------------------------------

def _conv_kernel(w_ref, shift_ref, x_ref, o_ref, *rest,
                 H, W, tcin, apply_relu, with_stats):
    """One (batch, cin-block) step of the fused 3x3 conv (+ BN shift + ReLU).

    w_ref:     (1, 9, Cout, tcin)        per-tap weight slabs for this cin block
    shift_ref: (Cout, 1)                 per-channel additive term (BN shift / 0)
    x_ref:     (1, tcin, (H+4)*W)        row-padded, flattened activations
    o_ref:     (1, Cout, H*W)            output tile (written on last cin block)
    stats_ref: (1, Cout, 2)              [sum, sum-of-squares] (training only)
    acc_ref:   (Cout, H*W) f32 scratch   persists across cin blocks
    """
    if with_stats:
        stats_ref, acc_ref = rest
    else:
        (acc_ref,) = rest

    HW = H * W
    cb = pl.program_id(1)

    @pl.when(cb == 0)
    def _init():
        acc_ref[...] = jnp.zeros_like(acc_ref)

    xflat = x_ref[0]          # (tcin, (H+4)*W), native dtype
    wv = w_ref[...]           # (1, 9, Cout, tcin), native dtype

    # Column masks reproducing the left / right zero padding of the conv.
    wcol = lax.broadcasted_iota(jnp.int32, (1, HW), 1) % W
    not_first_col = wcol != 0
    not_last_col = wcol != (W - 1)

    part = None
    for t, (dy, dx) in enumerate(_TAPS):
        off = (dy + 1) * W + dx - 1                  # lane shift of this tap
        rhs = xflat[:, off:off + HW]                 # (tcin, HW)
        if dx == 0:
            rhs = jnp.where(not_first_col, rhs, jnp.zeros_like(rhs))
        elif dx == 2:
            rhs = jnp.where(not_last_col, rhs, jnp.zeros_like(rhs))
        wt = wv[0, t]                                # (Cout, tcin)
        d = lax.dot_general(wt, rhs,
                            dimension_numbers=(((1,), (0,)), ((), ())),
                            preferred_element_type=jnp.float32)
        part = d if part is None else part + d
    acc_ref[...] += part

    @pl.when(cb == pl.num_programs(1) - 1)
    def _finalize():
        conv = acc_ref[...]                          # (Cout, HW) f32
        y = conv + shift_ref[...]
        if apply_relu:
            y = jnp.maximum(y, 0.0)
        o_ref[0] = y.astype(o_ref.dtype)
        if with_stats:
            stats_ref[0, :, 0:1] = jnp.sum(conv, axis=-1, keepdims=True)
            stats_ref[0, :, 1:2] = jnp.sum(conv * conv, axis=-1, keepdims=True)


def _affine_relu_kernel(scale_ref, shift_ref, x_ref, o_ref):
    """Per-channel affine + ReLU (training-mode BN second pass, in place)."""
    y = x_ref[0].astype(jnp.float32) * scale_ref[...] + shift_ref[...]
    o_ref[0] = jnp.maximum(y, 0.0).astype(o_ref.dtype)


# ---------------------------------------------------------------------------
# Wrapper helpers
# ---------------------------------------------------------------------------

def _vmem_caps():
    """(physical VMEM per core, usable scoped cap) — generation aware."""
    try:
        phys = int(pltpu.get_tpu_info().vmem_capacity_bytes)
    except Exception:
        phys = 64 << 20          # most conservative assumption (v7x per-TC)
    return phys, (phys * 3) // 4  # leave compiler-scratch headroom


def _pick_cin_tile(cin, cout, h, w, itemsize, budget):
    """Largest cin block whose per-step working set fits the VMEM budget."""
    hw = h * w

    def est(tc):
        return (2 * 9 * cout * tc * itemsize     # weights (double-buffered)
                + 2 * tc * (h + 4) * w * itemsize  # activation tile
                + 2 * cout * hw * itemsize         # output tile
                + cout * hw * 4                    # f32 accumulator scratch
                + 2 * tc * hw * 4)                 # shifted tap slabs (transient)

    if cin <= 8 or est(cin) <= budget:
        return cin, est(cin)
    # Over budget: pick a power-of-two, sublane-aligned block (>= 8) and let the
    # caller pad the channel axis up to a multiple of it.
    tc = 8
    while tc * 2 < cin and est(tc * 2) <= budget:
        tc *= 2
    return tc, est(tc)


def _compiler_params(step_bytes, semantics, cap):
    limit = int(min(max(step_bytes + (4 << 20), 16 << 20), cap))
    return pltpu.CompilerParams(dimension_semantics=semantics,
                                vmem_limit_bytes=limit)


def _conv3x3_fused(x, weight, shift, *, scale=None, apply_relu, with_stats):
    """y = relu?( conv3x3(x, scale*weight) + shift ), plus optional channel stats."""
    B, Cin, H, W = x.shape
    Cout, Cin2, kh, kw = weight.shape
    assert (Cin2, kh, kw) == (Cin, 3, 3), "ConvBNR uses a 3x3 / stride-1 / pad-1 conv"
    HW = H * W

    _, cap = _vmem_caps()
    itemsize = jnp.dtype(x.dtype).itemsize
    tcin, step_bytes = _pick_cin_tile(Cin, Cout, H, W, itemsize, budget=cap // 2)
    n_cb = pl.cdiv(Cin, tcin)
    cin_pad = n_cb * tcin - Cin

    # Weights: fold BN scale (inference), reorder to (n_cb, 9, Cout, tcin),
    # keep the activation dtype (no up-cast of bf16 operands).
    w = weight.astype(jnp.float32)
    if scale is not None:
        w = w * scale.astype(jnp.float32)[:, None, None, None]
    if cin_pad:
        w = jnp.pad(w, ((0, 0), (0, cin_pad), (0, 0), (0, 0)))
    wr = w.reshape(Cout, n_cb, tcin, 3, 3)
    wr = jnp.transpose(wr, (1, 3, 4, 0, 2)).reshape(n_cb, 9, Cout, tcin)
    wr = wr.astype(x.dtype)
    shift2 = shift.reshape(Cout, 1).astype(jnp.float32)

    # Activations: single row-halo pad, then a free contiguous flatten.  The
    # kernel reproduces the left/right conv padding with column masks.
    xr = jnp.pad(x, ((0, 0), (0, cin_pad), (2, 2), (0, 0)))
    xflat = xr.reshape(B, Cin + cin_pad, (H + 4) * W)

    out_shape = [jax.ShapeDtypeStruct((B, Cout, HW), x.dtype)]
    out_specs = [pl.BlockSpec((1, Cout, HW), lambda b, cb: (b, 0, 0))]
    if with_stats:
        out_shape.append(jax.ShapeDtypeStruct((B, Cout, 2), jnp.float32))
        out_specs.append(pl.BlockSpec((1, Cout, 2), lambda b, cb: (b, 0, 0)))

    kernel = functools.partial(_conv_kernel, H=H, W=W, tcin=tcin,
                               apply_relu=apply_relu, with_stats=with_stats)

    outs = pl.pallas_call(
        kernel,
        out_shape=tuple(out_shape),
        grid_spec=pltpu.PrefetchScalarGridSpec(
            num_scalar_prefetch=0,
            grid=(B, n_cb),
            in_specs=[
                pl.BlockSpec((1, 9, Cout, tcin), lambda b, cb: (cb, 0, 0, 0)),
                pl.BlockSpec((Cout, 1), lambda b, cb: (0, 0)),
                pl.BlockSpec((1, tcin, (H + 4) * W), lambda b, cb: (b, cb, 0)),
            ],
            out_specs=tuple(out_specs),
            scratch_shapes=[pltpu.VMEM((Cout, HW), jnp.float32)],
        ),
        compiler_params=_compiler_params(step_bytes, ("parallel", "arbitrary"), cap),
    )(wr, shift2, xflat)

    conv_flat = outs[0]
    stats = outs[1] if with_stats else None
    return conv_flat, stats


# ---------------------------------------------------------------------------
# Public entry points (ConvBNR forward)
# ---------------------------------------------------------------------------

def conv_bnr_inference(x, weight, gamma, beta, running_mean, running_var,
                       eps=1e-5):
    """ConvBNR forward, eval-mode BN (running stats folded into weights/shift)."""
    B, _, H, W = x.shape
    Cout = weight.shape[0]
    scale = gamma / jnp.sqrt(running_var + eps)
    shift = beta - running_mean * scale
    conv_flat, _ = _conv3x3_fused(x, weight, shift, scale=scale,
                                  apply_relu=True, with_stats=False)
    return conv_flat.reshape(B, Cout, H, W)


def conv_bnr_training(x, weight, gamma, beta, eps=1e-5):
    """ConvBNR forward, training-mode BN (batch statistics), PyTorch default."""
    B, _, H, W = x.shape
    Cout = weight.shape[0]
    HW = H * W

    # Pass 1: conv + in-kernel per-(batch, channel) sum / sum-of-squares.
    zeros = jnp.zeros((Cout,), jnp.float32)
    conv_flat, stats = _conv3x3_fused(x, weight, zeros, scale=None,
                                      apply_relu=False, with_stats=True)

    n = B * HW
    mean = jnp.sum(stats[:, :, 0], axis=0) / n
    var = jnp.maximum(jnp.sum(stats[:, :, 1], axis=0) / n - mean * mean, 0.0)
    scale = gamma / jnp.sqrt(var + eps)
    shift = beta - mean * scale

    # Pass 2: fused per-channel affine + ReLU, applied in place on the conv
    # buffer (input_output_aliases) with whole-image lane-dense tiles.
    _, cap = _vmem_caps()
    itemsize = jnp.dtype(x.dtype).itemsize
    step_bytes = 4 * Cout * HW * itemsize + 4 * Cout * 4

    out = pl.pallas_call(
        _affine_relu_kernel,
        out_shape=jax.ShapeDtypeStruct((B, Cout, HW), x.dtype),
        grid_spec=pltpu.PrefetchScalarGridSpec(
            num_scalar_prefetch=0,
            grid=(B,),
            in_specs=[
                pl.BlockSpec((Cout, 1), lambda b: (0, 0)),
                pl.BlockSpec((Cout, 1), lambda b: (0, 0)),
                pl.BlockSpec((1, Cout, HW), lambda b: (b, 0, 0)),
            ],
            out_specs=pl.BlockSpec((1, Cout, HW), lambda b: (b, 0, 0)),
        ),
        compiler_params=_compiler_params(step_bytes, ("parallel",), cap),
        input_output_aliases={2: 0},
    )(scale.reshape(Cout, 1).astype(jnp.float32),
      shift.reshape(Cout, 1).astype(jnp.float32),
      conv_flat)
    return out.reshape(B, Cout, H, W)


# ---------------------------------------------------------------------------
# Reference + test
# ---------------------------------------------------------------------------

def _conv_ref(x, weight):
    return lax.conv_general_dilated(
        x, weight, window_strides=(1, 1), padding=((1, 1), (1, 1)),
        dimension_numbers=("NCHW", "OIHW", "NCHW"),
        precision=lax.Precision.HIGHEST)


def _bnr_ref(conv, gamma, beta, mean, var, eps):
    y = (conv - mean[None, :, None, None]) / jnp.sqrt(var[None, :, None, None] + eps)
    y = y * gamma[None, :, None, None] + beta[None, :, None, None]
    return jnp.maximum(y, 0.0)


if __name__ == "__main__":
    key = jax.random.PRNGKey(0)
    kx, kw, kg, kb, km, kv = jax.random.split(key, 6)
    B, Cin, Cout, H, W = 2, 4, 8, 16, 16
    eps = 1e-5

    x = jax.random.normal(kx, (B, Cin, H, W), dtype=jnp.float32)
    weight = jax.random.normal(kw, (Cout, Cin, 3, 3), dtype=jnp.float32) * 0.2
    gamma = jax.random.normal(kg, (Cout,), dtype=jnp.float32) * 0.5 + 1.0
    beta = jax.random.normal(kb, (Cout,), dtype=jnp.float32) * 0.1
    running_mean = jax.random.normal(km, (Cout,), dtype=jnp.float32) * 0.1
    running_var = jax.random.uniform(kv, (Cout,), dtype=jnp.float32,
                                     minval=0.5, maxval=1.5)

    # Eval-mode ConvBNR (BN folded with running stats).
    out_eval = jax.jit(conv_bnr_inference)(x, weight, gamma, beta,
                                           running_mean, running_var, eps)
    out_eval = jax.block_until_ready(out_eval)
    ref_eval = _bnr_ref(_conv_ref(x, weight), gamma, beta,
                        running_mean, running_var, eps)
    assert out_eval.shape == (B, Cout, H, W)
    assert jnp.allclose(out_eval, ref_eval, atol=2e-4, rtol=2e-4), \
        "inference-mode mismatch vs reference"

    # Training-mode ConvBNR (batch statistics), PyTorch default forward.
    out_train = jax.jit(conv_bnr_training)(x, weight, gamma, beta, eps)
    out_train = jax.block_until_ready(out_train)
    conv_r = _conv_ref(x, weight)
    bmean = jnp.mean(conv_r, axis=(0, 2, 3))
    bvar = jnp.var(conv_r, axis=(0, 2, 3))
    ref_train = _bnr_ref(conv_r, gamma, beta, bmean, bvar, eps)
    assert jnp.allclose(out_train, ref_train, atol=2e-4, rtol=2e-4), \
        "training-mode mismatch vs reference"

    print("KERNEL_OK")
</pallas_src>

<mosaic_0001>
module attributes {stable_mosaic.version = 11 : i64} {
  func.func @_conv_kernel(%arg0: i32, %arg1: i32, %arg2: memref<1x9x8x4xf32, #tpu.memory_space<vmem>>, %arg3: memref<8x1xf32, #tpu.memory_space<vmem>>, %arg4: memref<1x4x320xf32, #tpu.memory_space<vmem>>, %arg5: memref<1x8x256xf32, #tpu.memory_space<vmem>>, %arg6: memref<8x256xf32, #tpu.memory_space<vmem>>) attributes {dimension_semantics = [#tpu.dimension_semantics<parallel>, #tpu.dimension_semantics<arbitrary>], iteration_bounds = array<i64: 2, 1>, scalar_prefetch = 0 : i64, scratch_operands = 1 : i64, tpu.core_type = #tpu.core_type<tc>, window_params = [{transform_indices = @transform_0, window_bounds = array<i64: 1, 9, 8, 4>}, {pipeline_mode = #tpu.pipeline_mode<synchronous>, transform_indices = @transform_1, window_bounds = array<i64: 8, 1>}, {transform_indices = @transform_2, window_bounds = array<i64: 1, 4, 320>}, {transform_indices = @transform_3, window_bounds = array<i64: 1, 8, 256>}]} {
    %c0_i32 = arith.constant 0 : i32
    %0 = arith.cmpi eq, %arg1, %c0_i32 : i32
    %1 = arith.extui %0 : i1 to i32
    %c0_i32_0 = arith.constant 0 : i32
    %2 = arith.cmpi ne, %1, %c0_i32_0 : i32
    scf.if %2 {
      %cst_32 = arith.constant 0.000000e+00 : f32
      %101 = vector.broadcast %cst_32 : f32 to vector<8x256xf32>
      %c0_33 = arith.constant 0 : index
      %c0_34 = arith.constant 0 : index
      %102 = vector.load %arg6[%c0_33, %c0_34] : memref<8x256xf32, #tpu.memory_space<vmem>>, vector<8x256xf32>
      tpu.vector_store %arg6[%c0_33, %c0_34], %101 {strides = array<i32>} : memref<8x256xf32, #tpu.memory_space<vmem>>, vector<8x256xf32>,
    } else {
    }
    %c0 = arith.constant 0 : index
    %c0_1 = arith.constant 0 : index
    %c0_2 = arith.constant 0 : index
    %3 = vector.load %arg4[%c0, %c0_1, %c0_2] : memref<1x4x320xf32, #tpu.memory_space<vmem>>, vector<1x4x320xf32>
    %4 = vector.shape_cast %3 : vector<1x4x320xf32> to vector<4x320xf32>
    %c0_3 = arith.constant 0 : index
    %c0_4 = arith.constant 0 : index
    %c0_5 = arith.constant 0 : index
    %c0_6 = arith.constant 0 : index
    %5 = vector.load %arg2[%c0_3, %c0_4, %c0_5, %c0_6] : memref<1x9x8x4xf32, #tpu.memory_space<vmem>>, vector<1x9x8x4xf32>
    %6 = tpu.iota {dimensions = array<i32: 1>} : vector<1x256xi32>
    %c16_i32 = arith.constant 16 : i32
    %c0_i32_7 = arith.constant 0 : i32
    %7 = arith.cmpi eq, %c16_i32, %c0_i32_7 : i32
    %c1_i32 = arith.constant 1 : i32
    %8 = arith.select %7, %c1_i32, %c16_i32 : i32
    %9 = vector.broadcast %8 : i32 to vector<1x256xi32>
    %10 = arith.remsi %6, %9 : vector<1x256xi32>
    %c0_i32_8 = arith.constant 0 : i32
    %11 = vector.broadcast %c0_i32_8 : i32 to vector<1x256xi32>
    %12 = arith.cmpi ne, %10, %11 : vector<1x256xi32>
    %c0_i32_9 = arith.constant 0 : i32
    %13 = vector.broadcast %c0_i32_9 : i32 to vector<1x256xi32>
    %14 = arith.cmpi slt, %10, %13 : vector<1x256xi32>
    %c0_i32_10 = arith.constant 0 : i32
    %15 = arith.cmpi slt, %8, %c0_i32_10 : i32
    %16 = vector.broadcast %15 : i1 to vector<1x256xi1>
    %17 = vector.broadcast %16 : vector<1x256xi1> to vector<1x256xi1>
    %18 = arith.xori %14, %17 : vector<1x256xi1>
    %19 = arith.andi %18, %12 : vector<1x256xi1>
    %20 = vector.broadcast %8 : i32 to vector<1x256xi32>
    %21 = arith.addi %10, %20 : vector<1x256xi32>
    %22 = arith.select %19, %21, %10 : vector<1x256xi1>, vector<1x256xi32>
    %c0_i32_11 = arith.constant 0 : i32
    %23 = vector.broadcast %c0_i32_11 : i32 to vector<1x256xi32>
    %24 = arith.cmpi ne, %22, %23 : vector<1x256xi32>
    %c15_i32 = arith.constant 15 : i32
    %25 = vector.broadcast %c15_i32 : i32 to vector<1x256xi32>
    %26 = arith.cmpi ne, %22, %25 : vector<1x256xi32>
    %27 = vector.extract_strided_slice %4 {offsets = [0, 15], sizes = [4, 256], strides = [1, 1]} : vector<4x320xf32> to vector<4x256xf32>
    %cst = arith.constant 0.000000e+00 : f32
    %28 = vector.broadcast %cst : f32 to vector<4x256xf32>
    %29 = vector.shape_cast %24 : vector<1x256xi1> to vector<1x256xi1>
    %30 = vector.broadcast %29 : vector<1x256xi1> to vector<4x256xi1>
    %31 = arith.select %30, %27, %28 : vector<4x256xi1>, vector<4x256xf32>
    %32 = vector.extract_strided_slice %5 {offsets = [0, 0, 0, 0], sizes = [1, 1, 8, 4], strides = [1, 1, 1, 1]} : vector<1x9x8x4xf32> to vector<1x1x8x4xf32>
    %33 = vector.shape_cast %32 : vector<1x1x8x4xf32> to vector<8x4xf32>
    %cst_12 = arith.constant dense<0.000000e+00> : vector<8x256xf32>
    %34 = tpu.matmul %33, %31, %cst_12 {dimension_numbers = #tpu.dot_dimension_numbers<[1], [0], [0], [1], [0, 0, 1, 1], [], []>} : vector<8x4xf32>, vector<4x256xf32>, vector<8x256xf32> -> vector<8x256xf32>
    %35 = vector.extract_strided_slice %4 {offsets = [0, 16], sizes = [4, 256], strides = [1, 1]} : vector<4x320xf32> to vector<4x256xf32>
    %36 = vector.extract_strided_slice %5 {offsets = [0, 1, 0, 0], sizes = [1, 1, 8, 4], strides = [1, 1, 1, 1]} : vector<1x9x8x4xf32> to vector<1x1x8x4xf32>
    %37 = vector.shape_cast %36 : vector<1x1x8x4xf32> to vector<8x4xf32>
    %cst_13 = arith.constant dense<0.000000e+00> : vector<8x256xf32>
    %38 = tpu.matmul %37, %35, %cst_13 {dimension_numbers = #tpu.dot_dimension_numbers<[1], [0], [0], [1], [0, 0, 1, 1], [], []>} : vector<8x4xf32>, vector<4x256xf32>, vector<8x256xf32> -> vector<8x256xf32>
    %39 = arith.addf %34, %38 : vector<8x256xf32>
    %40 = vector.extract_strided_slice %4 {offsets = [0, 17], sizes = [4, 256], strides = [1, 1]} : vector<4x320xf32> to vector<4x256xf32>
    %cst_14 = arith.constant 0.000000e+00 : f32
    %41 = vector.broadcast %cst_14 : f32 to vector<4x256xf32>
    %42 = vector.shape_cast %26 : vector<1x256xi1> to vector<1x256xi1>
    %43 = vector.broadcast %42 : vector<1x256xi1> to vector<4x256xi1>
    %44 = arith.select %43, %40, %41 : vector<4x256xi1>, vector<4x256xf32>
    %45 = vector.extract_strided_slice %5 {offsets = [0, 2, 0, 0], sizes = [1, 1, 8, 4], strides = [1, 1, 1, 1]} : vector<1x9x8x4xf32> to vector<1x1x8x4xf32>
    %46 = vector.shape_cast %45 : vector<1x1x8x4xf32> to vector<8x4xf32>
    %cst_15 = arith.constant dense<0.000000e+00> : vector<8x256xf32>
    %47 = tpu.matmul %46, %44, %cst_15 {dimension_numbers = #tpu.dot_dimension_numbers<[1], [0], [0], [1], [0, 0, 1, 1], [], []>} : vector<8x4xf32>, vector<4x256xf32>, vector<8x256xf32> -> vector<8x256xf32>
    %48 = arith.addf %39, %47 : vector<8x256xf32>
    %49 = vector.extract_strided_slice %4 {offsets = [0, 31], sizes = [4, 256], strides = [1, 1]} : vector<4x320xf32> to vector<4x256xf32>
    %cst_16 = arith.constant 0.000000e+00 : f32
    %50 = vector.broadcast %cst_16 : f32 to vector<4x256xf32>
    %51 = vector.shape_cast %24 : vector<1x256xi1> to vector<1x256xi1>
    %52 = vector.broadcast %51 : vector<1x256xi1> to vector<4x256xi1>
    %53 = arith.select %52, %49, %50 : vector<4x256xi1>, vector<4x256xf32>
    %54 = vector.extract_strided_slice %5 {offsets = [0, 3, 0, 0], sizes = [1, 1, 8, 4], strides = [1, 1, 1, 1]} : vector<1x9x8x4xf32> to vector<1x1x8x4xf32>
    %55 = vector.shape_cast %54 : vector<1x1x8x4xf32> to vector<8x4xf32>
    %cst_17 = arith.constant dense<0.000000e+00> : vector<8x256xf32>
    %56 = tpu.matmul %55, %53, %cst_17 {dimension_numbers = #tpu.dot_dimension_numbers<[1], [0], [0], [1], [0, 0, 1, 1], [], []>} : vector<8x4xf32>, vector<4x256xf32>, vector<8x256xf32> -> vector<8x256xf32>
    %57 = arith.addf %48, %56 : vector<8x256xf32>
    %58 = vector.extract_strided_slice %4 {offsets = [0, 32], sizes = [4, 256], strides = [1, 1]} : vector<4x320xf32> to vector<4x256xf32>
    %59 = vector.extract_strided_slice %5 {offsets = [0, 4, 0, 0], sizes = [1, 1, 8, 4], strides = [1, 1, 1, 1]} : vector<1x9x8x4xf32> to vector<1x1x8x4xf32>
    %60 = vector.shape_cast %59 : vector<1x1x8x4xf32> to vector<8x4xf32>
    %cst_18 = arith.constant dense<0.000000e+00> : vector<8x256xf32>
    %61 = tpu.matmul %60, %58, %cst_18 {dimension_numbers = #tpu.dot_dimension_numbers<[1], [0], [0], [1], [0, 0, 1, 1], [], []>} : vector<8x4xf32>, vector<4x256xf32>, vector<8x256xf32> -> vector<8x256xf32>
    %62 = arith.addf %57, %61 : vector<8x256xf32>
    %63 = vector.extract_strided_slice %4 {offsets = [0, 33], sizes = [4, 256], strides = [1, 1]} : vector<4x320xf32> to vector<4x256xf32>
    %cst_19 = arith.constant 0.000000e+00 : f32
    %64 = vector.broadcast %cst_19 : f32 to vector<4x256xf32>
    %65 = vector.shape_cast %26 : vector<1x256xi1> to vector<1x256xi1>
    %66 = vector.broadcast %65 : vector<1x256xi1> to vector<4x256xi1>
    %67 = arith.select %66, %63, %64 : vector<4x256xi1>, vector<4x256xf32>
    %68 = vector.extract_strided_slice %5 {offsets = [0, 5, 0, 0], sizes = [1, 1, 8, 4], strides = [1, 1, 1, 1]} : vector<1x9x8x4xf32> to vector<1x1x8x4xf32>
    %69 = vector.shape_cast %68 : vector<1x1x8x4xf32> to vector<8x4xf32>
    %cst_20 = arith.constant dense<0.000000e+00> : vector<8x256xf32>
    %70 = tpu.matmul %69, %67, %cst_20 {dimension_numbers = #tpu.dot_dimension_numbers<[1], [0], [0], [1], [0, 0, 1, 1], [], []>} : vector<8x4xf32>, vector<4x256xf32>, vector<8x256xf32> -> vector<8x256xf32>
    %71 = arith.addf %62, %70 : vector<8x256xf32>
    %72 = vector.extract_strided_slice %4 {offsets = [0, 47], sizes = [4, 256], strides = [1, 1]} : vector<4x320xf32> to vector<4x256xf32>
    %cst_21 = arith.constant 0.000000e+00 : f32
    %73 = vector.broadcast %cst_21 : f32 to vector<4x256xf32>
    %74 = vector.shape_cast %24 : vector<1x256xi1> to vector<1x256xi1>
    %75 = vector.broadcast %74 : vector<1x256xi1> to vector<4x256xi1>
    %76 = arith.select %75, %72, %73 : vector<4x256xi1>, vector<4x256xf32>
    %77 = vector.extract_strided_slice %5 {offsets = [0, 6, 0, 0], sizes = [1, 1, 8, 4], strides = [1, 1, 1, 1]} : vector<1x9x8x4xf32> to vector<1x1x8x4xf32>
    %78 = vector.shape_cast %77 : vector<1x1x8x4xf32> to vector<8x4xf32>
    %cst_22 = arith.constant dense<0.000000e+00> : vector<8x256xf32>
    %79 = tpu.matmul %78, %76, %cst_22 {dimension_numbers = #tpu.dot_dimension_numbers<[1], [0], [0], [1], [0, 0, 1, 1], [], []>} : vector<8x4xf32>, vector<4x256xf32>, vector<8x256xf32> -> vector<8x256xf32>
    %80 = arith.addf %71, %79 : vector<8x256xf32>
    %81 = vector.extract_strided_slice %4 {offsets = [0, 48], sizes = [4, 256], strides = [1, 1]} : vector<4x320xf32> to vector<4x256xf32>
    %82 = vector.extract_strided_slice %5 {offsets = [0, 7, 0, 0], sizes = [1, 1, 8, 4], strides = [1, 1, 1, 1]} : vector<1x9x8x4xf32> to vector<1x1x8x4xf32>
    %83 = vector.shape_cast %82 : vector<1x1x8x4xf32> to vector<8x4xf32>
    %cst_23 = arith.constant dense<0.000000e+00> : vector<8x256xf32>
    %84 = tpu.matmul %83, %81, %cst_23 {dimension_numbers = #tpu.dot_dimension_numbers<[1], [0], [0], [1], [0, 0, 1, 1], [], []>} : vector<8x4xf32>, vector<4x256xf32>, vector<8x256xf32> -> vector<8x256xf32>
    %85 = arith.addf %80, %84 : vector<8x256xf32>
    %86 = vector.extract_strided_slice %4 {offsets = [0, 49], sizes = [4, 256], strides = [1, 1]} : vector<4x320xf32> to vector<4x256xf32>
    %cst_24 = arith.constant 0.000000e+00 : f32
    %87 = vector.broadcast %cst_24 : f32 to vector<4x256xf32>
    %88 = vector.shape_cast %26 : vector<1x256xi1> to vector<1x256xi1>
    %89 = vector.broadcast %88 : vector<1x256xi1> to vector<4x256xi1>
    %90 = arith.select %89, %86, %87 : vector<4x256xi1>, vector<4x256xf32>
    %91 = vector.extract_strided_slice %5 {offsets = [0, 8, 0, 0], sizes = [1, 1, 8, 4], strides = [1, 1, 1, 1]} : vector<1x9x8x4xf32> to vector<1x1x8x4xf32>
    %92 = vector.shape_cast %91 : vector<1x1x8x4xf32> to vector<8x4xf32>
    %cst_25 = arith.constant dense<0.000000e+00> : vector<8x256xf32>
    %93 = tpu.matmul %92, %90, %cst_25 {dimension_numbers = #tpu.dot_dimension_numbers<[1], [0], [0], [1], [0, 0, 1, 1], [], []>} : vector<8x4xf32>, vector<4x256xf32>, vector<8x256xf32> -> vector<8x256xf32>
    %94 = arith.addf %85, %93 : vector<8x256xf32>
    %c0_26 = arith.constant 0 : index
    %c0_27 = arith.constant 0 : index
    %95 = vector.load %arg6[%c0_26, %c0_27] : memref<8x256xf32, #tpu.memory_space<vmem>>, vector<8x256xf32>
    %96 = arith.addf %95, %94 : vector<8x256xf32>
    %c0_28 = arith.constant 0 : index
    %c0_29 = arith.constant 0 : index
    %97 = vector.load %arg6[%c0_28, %c0_29] : memref<8x256xf32, #tpu.memory_space<vmem>>, vector<8x256xf32>
    tpu.vector_store %arg6[%c0_28, %c0_29], %96 {strides = array<i32>} : memref<8x256xf32, #tpu.memory_space<vmem>>, vector<8x256xf32>,
    %c0_i32_30 = arith.constant 0 : i32
    %98 = arith.cmpi eq, %arg1, %c0_i32_30 : i32
    %99 = arith.extui %98 : i1 to i32
    %c0_i32_31 = arith.constant 0 : i32
    %100 = arith.cmpi ne, %99, %c0_i32_31 : i32
    scf.if %100 {
      %c0_32 = arith.constant 0 : index
      %c0_33 = arith.constant 0 : index
      %101 = vector.load %arg6[%c0_32, %c0_33] : memref<8x256xf32, #tpu.memory_space<vmem>>, vector<8x256xf32>
      %c0_34 = arith.constant 0 : index
      %c0_35 = arith.constant 0 : index
      %102 = vector.load %arg3[%c0_34, %c0_35] : memref<8x1xf32, #tpu.memory_space<vmem>>, vector<8x1xf32>
      %103 = vector.broadcast %102 : vector<8x1xf32> to vector<8x256xf32>
      %104 = arith.addf %101, %103 : vector<8x256xf32>
      %cst_36 = arith.constant 0.000000e+00 : f32
      %105 = vector.broadcast %cst_36 : f32 to vector<8x256xf32>
      %106 = arith.maximumf %104, %105 : vector<8x256xf32>
      %c0_37 = arith.constant 0 : index
      %c0_38 = arith.constant 0 : index
      %c0_39 = arith.constant 0 : index
      %107 = vector.load %arg5[%c0_37, %c0_38, %c0_39] : memref<1x8x256xf32, #tpu.memory_space<vmem>>, vector<1x8x256xf32>
      %108 = vector.shape_cast %107 : vector<1x8x256xf32> to vector<8x256xf32>
      %109 = vector.shape_cast %106 : vector<8x256xf32> to vector<1x8x256xf32>
      tpu.vector_store %arg5[%c0_37, %c0_38, %c0_39], %109 {strides = array<i32>} : memref<1x8x256xf32, #tpu.memory_space<vmem>>, vector<1x8x256xf32>,
    } else {
    }
    return
  }
  func.func @transform_0(%arg0: i32, %arg1: i32) -> (i32, i32, i32, i32) {
    %c0_i32 = arith.constant 0 : i32
    %c0_i32_0 = arith.constant 0 : i32
    %c0_i32_1 = arith.constant 0 : i32
    %c0_i32_2 = arith.constant 0 : i32
    return %arg1, %c0_i32, %c0_i32_0, %c0_i32_1 : i32, i32, i32, i32
  }
  func.func @transform_1(%arg0: i32, %arg1: i32) -> (i32, i32) {
    %c0_i32 = arith.constant 0 : i32
    %c0_i32_0 = arith.constant 0 : i32
    %c0_i32_1 = arith.constant 0 : i32
    return %c0_i32, %c0_i32_0 : i32, i32
  }
  func.func @transform_2(%arg0: i32, %arg1: i32) -> (i32, i32, i32) {
    %c0_i32 = arith.constant 0 : i32
    %c0_i32_0 = arith.constant 0 : i32
    return %arg0, %arg1, %c0_i32 : i32, i32, i32
  }
  func.func @transform_3(%arg0: i32, %arg1: i32) -> (i32, i32, i32) {
    %c0_i32 = arith.constant 0 : i32
    %c0_i32_0 = arith.constant 0 : i32
    %c0_i32_1 = arith.constant 0 : i32
    return %arg0, %c0_i32, %c0_i32_0 : i32, i32, i32
  }
}

</mosaic_0001>

<bundles_post_ra>
// kernel: conv_bnr_inference.1
= control target key start
LH: loop header
LB: loop body
LE: loop exit
PB: predicated region body
PF: predicated region fallthrough
CT: control target
= control target key end

     0   :  { %s1371_s12 = smov 0   ;;  %s1373_s13 = smov 0   ;;  %s1518_s0 = inlined_call_operand.vmem [shape: f32[1,9,8,4], index: 0, kind: input, shape index: {}]   ;;  %s1519_s1 = inlined_call_operand.vmem [shape: f32[8,1], index: 1, kind: input, shape index: {}]   ;;  %s1520_s2 = inlined_call_operand.vmem [shape: f32[2,4,320], index: 2, kind: input, shape index: {}]   ;;  %s1521_s3 = inlined_call_operand.vmem [shape: f32[2,8,256], index: 3, kind: output, shape index: {}]  }
   0x1   :  { %s1375_s14 = smov 0  }
   0x2 LB: > { %s25_s15 = sadd.s32 1, %s1334_s13  ;;  %p1227_p0 = scmp.ge.s32.totalorder %s1338_s14, 1  ;;  %s1338_s14 = sphi %s1375_s14, %s13_s14   ;;  %s1334_s13 = sphi %s1373_s13, %s1531_s13   ;;  %s1330_s12 = sphi %s1371_s12, %s1530_s12  }
   0x3   : > { %p27_p1 = scmp.ge.s32.totalorder %s25_s15, 2  ;;  %p165_p2 = scmp.lt.s32.totalorder %s1338_s14, 3 }
   0x5   : > { %s1533_s15 = smov (%p27_p1, %s25_s15), 0  ;;  %p166_p3 = pnand %p1227_p0, %p165_p2 }
   0x6   : > { %p203_p4 = scmp.lt.s32.totalorder (!%p166_p3), %s1330_s12, 1  ;;  %s1340_s20 = smov (!%p166_p3), 96   ;;  %v1341_v3 = vmov (!%p166_p3), 0.0   ;;  %v1349_v4 = vmov (!%p166_p3), 0   ;;  %v1122_v5 = vld [vmem:[%s1519_s1] sm:$0xff] (!%p166_p3)  ;;  %v234_v6 = vlaneseq (!%p166_p3)  ;;  %vm743_vm0 = vcmask (!%p166_p3), 777216  }
   0x7   : > { %169 = sbr.rel (%p166_p3) target bundleno = 409 (0x199), region = 32  ;;  %728 = vmatprep.mubr.f32.mxu0 (!%p166_p3), %v1341_v3  ;;  %367 = vmatprep.mubr.f32.mxu1 (!%p166_p3), %v1341_v3  ;;  %s1342_s21 = smov (!%p166_p3), 95   ;;  %vm654_vm1 = vcmask (!%p166_p3), 785408   ;;  %vm298_vm2 = vcmask (!%p166_p3), 1043456   ;;  %v229_v21 = vld [vmem:[%s1518_s0 + $0x20] sm:$0xff] (!%p166_p3)  ;;  %vm294_vm4 = vcmask (!%p166_p3), 31744  }
   0x8   : > { %s1343_s22 = smov (!%p166_p3), 112   ;;  %s1344_s23 = smov (!%p166_p3), 113   ;;  %1313 = vset.pattern.permute.xlu1 (!%p166_p3), %v1349_v4  ;;  %1314 = vset.pattern.permute.xlu0 (!%p166_p3), %v1349_v4  ;;  %v235_v7 = vand.u32 (!%p166_p3), 127, %v234_v6  ;;  %vm291_vm5 = vcmask (!%p166_p3), 916480   ;;  %v226_v31 = vld [vmem:[%s1518_s0 + $0x8] sm:$0xff] (!%p166_p3)  ;;  %vm278_vm7 = vcmask (!%p166_p3), 924672  }
   0x9   : > { %s1345_s24 = smov (!%p166_p3), 81   ;;  %s1346_s25 = smov (!%p166_p3), 111   ;;  %v230_v33 = vld [vmem:[%s1518_s0 + $0x28] sm:$0xff] (!%p166_p3)  ;;  %vm838_vm9 = vcmask (!%p166_p3), 662528   ;;  %v225_v44 = vld [vmem:[%s1518_s0] sm:$0xff] (!%p166_p3)  ;;  %v231_v50 = vld [vmem:[%s1518_s0 + $0x30] sm:$0xff] (!%p166_p3) }
   0xa   : > { %s1347_s26 = smov (!%p166_p3), 80   ;;  %s1348_s27 = smov (!%p166_p3), 97   ;;  %v236_v10 = vadd.s32 (!%p166_p3), 128, %v235_v7  ;;  %v241_v14 = vand.u32 (!%p166_p3), 15, %v235_v7  ;;  %vm464_vm11 = vcmask (!%p166_p3), 908288   ;;  %vm933_vm12 = vcmask (!%p166_p3), 654336  }
   0xb   : > { %s1350_s28 = smov (!%p166_p3), 79   ;;  %v227_v58 = vld [vmem:[%s1518_s0 + $0x10] sm:$0xff] (!%p166_p3)  ;;  %vm559_vm13 = vcmask (!%p166_p3), 793600   ;;  %vm1022_vm14 = vcmask (!%p166_p3), 646144  }
   0xc   : > { %v248_v12 = vand.u32 (!%p166_p3), 15, %v236_v10  ;;  %vm1412_vm6 = vcmp.ne.s32.totalorder (!%p166_p3), %v241_v14, 15  ;;  %vm1444_vm10 = vcmp.ne.s32.totalorder (!%p166_p3), %v241_v14, 0 }
   0xe   : > { %s1535_s12 = smov (!%p203_p4, %s1330_s12), 1  ;;  %vm1400_vm3 = vcmp.ne.s32.totalorder %v248_v12, 15  ;;  %vm1433_vm8 = vcmp.ne.s32.totalorder %v248_v12, 0 }
   0xf   : > { %s1277_s16 = smul.u32 12, %s1535_s12 }
  0x11   : > { %s211_s19 = scalar_lea.vmem %s1520_s2, %s1277_s16 }
  0x12   : > { %v224_v0 = vld [vmem:[%s211_s19 + $0x8] sm:$0xf]  ;;  %v223_v1 = vld [vmem:[%s211_s19] sm:$0xff] }
  0x13   : > { %652 = vrot.lane.b32.xlu0 %v224_v0, %s1340_s20  ;;  %648 = vrot.lane.b32.xlu1 %v223_v1, %s1340_s20  ;;  %v271_v2 = vcombine.high %v223_v1, %v223_v1 }
  0x17   : > { %741 = vrot.lane.b32.xlu0 %v224_v0, %s1342_s21  ;;  %739 = vrot.lane.b32.xlu1 %v271_v2, %s1342_s21 }
  0x1b   : > { %287 = vrot.lane.b32.xlu1 %v271_v2, %s1343_s22  ;;  %650 = vrot.lane.b32.xlu0 %v271_v2, %s1340_s20 }
  0x1f   : > { %737 = vrot.lane.b32.xlu1 %v223_v1, %s1342_s21  ;;  %289 = vrot.lane.b32.xlu0 %v224_v0, %s1343_s22 }
  0x23   : > { %274 = vrot.lane.b32.xlu1 %v271_v2, %s1344_s23  ;;  %285 = vrot.lane.b32.xlu0 %v223_v1, %s1343_s22 }
  0x27   : > { %834 = vrot.lane.b32.xlu1 %v271_v2, %s1345_s24  ;;  %276 = vrot.lane.b32.xlu0 %v224_v0, %s1344_s23 }
  0x2b   : > { %272 = vrot.lane.b32.xlu1 %v223_v1, %s1344_s23  ;;  %836 = vrot.lane.b32.xlu0 %v224_v0, %s1345_s24 }
  0x2f   : > { %460 = vrot.lane.b32.xlu1 %v271_v2, %s1346_s25  ;;  %832 = vrot.lane.b32.xlu0 %v223_v1, %s1345_s24 }
  0x33   : > { %458 = vrot.lane.b32.xlu1 %v223_v1, %s1346_s25  ;;  %462 = vrot.lane.b32.xlu0 %v224_v0, %s1346_s25 }
  0x37   : > { %931 = vrot.lane.b32.xlu1 %v224_v0, %s1347_s26  ;;  %929 = vrot.lane.b32.xlu0 %v271_v2, %s1347_s26 }
  0x3b   : > { %555 = vrot.lane.b32.xlu1 %v271_v2, %s1348_s27  ;;  %927 = vrot.lane.b32.xlu0 %v223_v1, %s1347_s26  ;;  %s1260_s26 = sshll.u32 %s1535_s12, 4 }
  0x3c   : > { %s216_s29 = scalar_lea.vmem %s1521_s3, %s1260_s26 }
  0x3f   : > { %1018 = vrot.lane.b32.xlu1 %v271_v2, %s1350_s28  ;;  %557 = vrot.lane.b32.xlu0 %v224_v0, %s1348_s27 }
  0x43   : > { %553 = vrot.lane.b32.xlu1 %v223_v1, %s1348_s27  ;;  %1020 = vrot.lane.b32.xlu0 %v224_v0, %s1350_s28  ;;  %v232_v0 = vld [vmem:[%s1518_s0 + $0x38] sm:$0xff] }
  0x47   : > { %1016 = vrot.lane.b32.xlu0 %v223_v1, %s1350_s28  ;;  %1125 = vperm.xlu1 %1313, %v1122_v5  }
  0x85   : > { %v653_v8 = vpop.permute.xlu0 %652  ;;  %v649_v9 = vpop.permute.xlu1 %648 }
  0x89   : > { %v742_v11 = vpop.permute.xlu0 %741  ;;  %v740_v13 = vpop.permute.xlu1 %739 }
  0x8a   : > { %v745_v16 = vsel %vm743_vm0, %v740_v13, %v742_v11  ;;  %v228_v11 = vld [vmem:[%s1518_s0 + $0x18] sm:$0xff] }
  0x8b   : > { %v749_v22 = vsel %vm1400_vm3, %v745_v16, 0.0  ;;  %v233_v16 = vld [vmem:[%s1518_s0 + $0x40] sm:$0xff] }
  0x8d   : > { %v288_v17 = vpop.permute.xlu1 %287  ;;  %v651_v18 = vpop.permute.xlu0 %650 }
  0x8e   : > { %v656_v19 = vsel %vm654_vm1, %v651_v18, %v653_v8  ;;  %v655_v20 = vsel %vm654_vm1, %v649_v9, %v651_v18 }
  0x8f   : > { %1243 = vmatprep.subr.msk.mxu0 %vm298_vm2, %v656_v19 }
  0x90   : > { %1244 = vmatpush1.msk.msra.mxu0 %vm298_vm2, %v655_v20 }
  0x91   : > { %v738_v24 = vpop.permute.xlu1 %737  ;;  %1246 = vmatprep.subr.msk.mxu0 %vm298_vm2, %v749_v22  ;;  %v290_v25 = vpop.permute.xlu0 %289  ;;  %1245 = vmatmul.mubr.msk.f32.vlgmr.msra.gmra.mrb[0].mxu0 %vm294_vm4, %v229_v21 }
  0x92   : > { %v744_v26 = vsel %vm743_vm0, %v738_v24, %v740_v13  ;;  %v293_v27 = vsel %vm291_vm5, %v288_v17, %v290_v25  ;;  %823 = vmatprep.mubr.f32.mxu0 %v1341_v3 }
  0x93   : > { %v748_v28 = vsel %vm1412_vm6, %v744_v26, 0.0  ;;  %1231 = vmatprep.subr.msk.mxu1 %vm298_vm2, %v293_v27 }
  0x94   : > { %1247 = vmatpush1.msk.msra.mxu0 %vm298_vm2, %v748_v28 }
  0x95   : > { %v275_v29 = vpop.permute.xlu1 %274  ;;  %v286_v30 = vpop.permute.xlu0 %285 }
  0x96   : > { %v292_v32 = vsel %vm291_vm5, %v286_v30, %v288_v17 }
  0x97   : > { %1232 = vmatpush1.msk.msra.mxu1 %vm298_vm2, %v292_v32 }
  0x98   : > { %1233 = vmatmul.mubr.msk.f32.vlgmr.msra.gmra.mrb[0].mxu1 %vm294_vm4, %v226_v31 }
  0x99   : > { %v835_v35 = vpop.permute.xlu1 %834  ;;  %v277_v36 = vpop.permute.xlu0 %276  ;;  %1248 = vmatmul.mubr.msk.f32.vlgmr.msra.gmra.mrb[0].mxu0 %vm294_vm4, %v230_v33  ;;  %447 = vmatprep.mubr.f32.mxu1 %v1341_v3 }
  0x9a   : > { %v280_v37 = vsel %vm278_vm7, %v275_v29, %v277_v36  ;;  %918 = vmatprep.mubr.f32.mxu0 %v1341_v3 }
  0x9b   : > { %v284_v38 = vsel %vm1433_vm8, %v280_v37, 0.0 }
  0x9c   : > { %1234 = vmatprep.subr.msk.mxu1 %vm298_vm2, %v284_v38 }
  0x9d   : > { %v273_v40 = vpop.permute.xlu1 %272  ;;  %v837_v41 = vpop.permute.xlu0 %836 }
  0x9e   : > { %v279_v42 = vsel %vm278_vm7, %v273_v40, %v275_v29  ;;  %v840_v43 = vsel %vm838_vm9, %v835_v35, %v837_v41 }
  0x9f   : > { %v283_v45 = vsel %vm1444_vm10, %v279_v42, 0.0  ;;  %v844_v46 = vsel %vm1433_vm8, %v840_v43, 0.0 }
  0xa0   : > { %1235 = vmatpush1.msk.msra.mxu1 %vm298_vm2, %v283_v45  ;;  %1249 = vmatprep.subr.msk.mxu0 %vm298_vm2, %v844_v46 }
  0xa1   : > { %v461_v47 = vpop.permute.xlu1 %460  ;;  %v833_v48 = vpop.permute.xlu0 %832  ;;  %1236 = vmatmul.mubr.msk.f32.vlgmr.msra.gmra.mrb[0].mxu1 %vm294_vm4, %v225_v44 }
  0xa2   : > { %v839_v49 = vsel %vm838_vm9, %v833_v48, %v835_v35  ;;  %544 = vmatprep.mubr.f32.mxu1 %v1341_v3 }
  0xa3   : > { %v843_v51 = vsel %vm1444_vm10, %v839_v49, 0.0 }
  0xa4   : > { %1250 = vmatpush1.msk.msra.mxu0 %vm298_vm2, %v843_v51 }
  0xa5   : > { %v459_v52 = vpop.permute.xlu1 %458  ;;  %v463_v53 = vpop.permute.xlu0 %462  ;;  %1251 = vmatmul.mubr.msk.f32.vlgmr.msra.gmra.mrb[0].mxu0 %vm294_vm4, %v231_v50 }
  0xa6   : > { %v465_v54 = vsel %vm464_vm11, %v459_v52, %v461_v47  ;;  %v466_v55 = vsel %vm464_vm11, %v461_v47, %v463_v53  ;;  %1007 = vmatprep.mubr.f32.mxu0 %v1341_v3 }
  0xa7   : > { %v469_v56 = vsel %vm1412_vm6, %v465_v54, 0.0  ;;  %v470_v57 = vsel %vm1400_vm3, %v466_v55, 0.0 }
  0xa8   : > { %1237 = vmatprep.subr.msk.mxu1 %vm298_vm2, %v470_v57 }
  0xa9   : > { %v932_v59 = vpop.permute.xlu1 %931  ;;  %1238 = vmatpush1.msk.msra.mxu1 %vm298_vm2, %v469_v56  ;;  %v930_v60 = vpop.permute.xlu0 %929 }
  0xaa   : > { %v935_v61 = vsel %vm933_vm12, %v930_v60, %v932_v59  ;;  %1239 = vmatmul.mubr.msk.f32.vlgmr.msra.gmra.mrb[0].mxu1 %vm294_vm4, %v227_v58 }
  0xab   : > { %1252 = vmatprep.subr.msk.mxu0 %vm298_vm2, %v935_v61  ;;  %639 = vmatprep.mubr.f32.mxu1 %v1341_v3 }
  0xad   : > { %v556_v62 = vpop.permute.xlu1 %555  ;;  %v928_v63 = vpop.permute.xlu0 %927 }
  0xae   : > { %v934_v1 = vsel %vm933_vm12, %v928_v63, %v930_v60 }
  0xaf   : > { %1253 = vmatpush1.msk.msra.mxu0 %vm298_vm2, %v934_v1 }
  0xb0   : > { %1254 = vmatmul.mubr.msk.f32.vlgmr.msra.gmra.mrb[0].mxu0 %vm294_vm4, %v232_v0 }
  0xb1   : > { %v1019_v2 = vpop.permute.xlu1 %1018  ;;  %v558_v4 = vpop.permute.xlu0 %557  ;;  %1102 = vmatprep.mubr.f32.mxu0 %v1341_v3 }
  0xb2   : > { %v561_v5 = vsel %vm559_vm13, %v556_v62, %v558_v4 }
  0xb3   : > { %v565_v6 = vsel %vm1433_vm8, %v561_v5, 0.0 }
  0xb4   : > { %1240 = vmatprep.subr.msk.mxu1 %vm298_vm2, %v565_v6 }
  0xb5   : > { %v554_v7 = vpop.permute.xlu1 %553  ;;  %v1021_v8 = vpop.permute.xlu0 %1020 }
  0xb6   : > { %v560_v9 = vsel %vm559_vm13, %v554_v7, %v556_v62  ;;  %v1024_v10 = vsel %vm1022_vm14, %v1019_v2, %v1021_v8 }
  0xb7   : > { %v564_v12 = vsel %vm1444_vm10, %v560_v9, 0.0  ;;  %v1028_v3 = vsel %vm1400_vm3, %v1024_v10, 0.0 }
  0xb8   : > { %1241 = vmatpush1.msk.msra.mxu1 %vm298_vm2, %v564_v12  ;;  %1255 = vmatprep.subr.msk.mxu0 %vm298_vm2, %v1028_v3 }
  0xb9   : > { %1242 = vmatmul.mubr.msk.f32.vlgmr.msra.gmra.mrb[0].mxu1 %vm294_vm4, %v228_v11  ;;  %v1017_v13 = vpop.permute.xlu0 %1016 }
  0xba   : > { %v1023_v14 = vsel %vm1022_vm14, %v1017_v13, %v1019_v2 }
  0xbb   : > { %v1027_v17 = vsel %vm1412_vm6, %v1023_v14, 0.0 }
  0xbc   : > { %1256 = vmatpush1.msk.msra.mxu0 %vm298_vm2, %v1027_v17 }
  0xbd   : > { %1257 = vmatmul.mubr.msk.f32.vlgmr.msra.gmra.mrb[0].mxu0 %vm294_vm4, %v233_v16 }
  0xc6   : > { %v1126_v20 = vpop.permute.xlu1 %1125 }
 0x18c   : > { %v641_v15 = vpop.f32.mrb[0].mxu1 }
 0x18d   : > { %v643_v18 = vpop.f32.mrb[1].mxu1 }
 0x190   : > { %v1104_v19 = vpop.f32.mrb[0].mxu0 }
 0x191   : > { %v1261_v21 = vadd.f32 %v1104_v19, %v641_v15  ;;  %v1106_v22 = vpop.f32.mrb[1].mxu0 }
 0x192   : > { %v1262_v24 = vadd.f32 %v1106_v22, %v643_v18 }
 0x193   : > { %v1128_v25 = vadd.f32 %v1261_v21, %v1126_v20 }
 0x194   : > { %v1129_v26 = vadd.f32 %v1262_v24, %v1126_v20 }
 0x195   : > { %v1130_v23 = vmax.f32 %v1128_v25, 0.0 }
 0x196   : > { %v1131_v27 = vmax.f32 %v1129_v26, 0.0 }
 0x197   : > { %1132 = vst [vmem:[%s216_s29] sm:$0xff] %v1130_v23 }
 0x198   : > { %1133 = vst [vmem:[%s216_s29 + $0x8] sm:$0xff] %v1131_v27 }
 0x199 PF: > { %s13_s14 = sadd.s32 1, %s1338_s14   ;;  %s1530_s12 = smov %s1334_s13 }
 0x19a   : > { %p10_p5 = scmp.ge.s32.totalorder %s13_s14, 4   ;;  %s1531_s13 = smov %s1533_s15 }
 0x19c   :  { %12 = sbr.rel (!%p10_p5) target bundleno = 2 (0x2), region = 73 }

</bundles_post_ra>
